<compile_context>
chip_gen: v7x
topology: tpu7x:2x2x1
jax: 0.10.0
libtpu: 0.0.40
codegen_flags: <defaults>
</compile_context>

<pallas_src>
import functools

import jax
import jax.numpy as jnp
from jax.experimental import pallas as pl
from jax.experimental.pallas import tpu as pltpu

HIDDEN_PAD = 128   # hidden dims 50 padded to one full lane tile
OUT_PAD = 128      # logits computed on a full 128-lane tile
OUT_STORE = 8      # HBM output width (>= out_dim=3); 16x less writeback than 128 lanes
NEG_BIG = -1e30    # drives padded logit lanes to exp(...) == 0 without NaN risk


def _round_up(x, m):
    return ((x + m - 1) // m) * m


def _cdiv(a, b):
    return -(-a // b)


def mlp_softmax_kernel(x_ref, w_ref, b_ref, o_ref, *, in_dim):
    """One fused MLP forward on a batch tile. All weight slices are static views."""
    h = in_dim
    b_all = b_ref[...]                                    # [8, 128] f32 (rows 0..2 used)

    # layer1 + ReLU   (bf16 operands on the MXU, f32 accumulate / bias / ReLU)
    xb = x_ref[...].astype(jnp.bfloat16)
    h1 = jnp.dot(xb, w_ref[0:h, :],
                 preferred_element_type=jnp.float32) + b_all[0:1, :]
    h1 = jnp.maximum(h1, 0.0)

    # layer2 + ReLU
    h2 = jnp.dot(h1.astype(jnp.bfloat16), w_ref[h:h + HIDDEN_PAD, :],
                 preferred_element_type=jnp.float32) + b_all[1:2, :]
    h2 = jnp.maximum(h2, 0.0)

    # layer3 + softmax over the 128-wide logit slab.
    # Padded logit columns carry a -1e30 bias so exp(...) == 0 and the
    # denominator only sees the 3 real classes.
    logits = jnp.dot(h2.astype(jnp.bfloat16),
                     w_ref[h + HIDDEN_PAD:h + 2 * HIDDEN_PAD, :],
                     preferred_element_type=jnp.float32) + b_all[2:3, :]
    m = jnp.max(logits, axis=1, keepdims=True)
    e = jnp.exp(logits - m)
    denom = jnp.sum(e, axis=1, keepdims=True)
    # Exact division (not approx reciprocal): rows sum to 1 and the divide is
    # nowhere near the critical slot.  Only the first OUT_STORE lanes go to HBM.
    o_ref[...] = (e[:, :OUT_STORE] / denom).astype(o_ref.dtype)


def pack_params(w1, b1, w2, b2, w3, b3):
    """Pack/zero-pad all parameters once: bf16 weight slab + f32 bias slab."""
    in_dim = w1.shape[0]
    w1p = jnp.zeros((in_dim, HIDDEN_PAD), jnp.float32).at[:, :w1.shape[1]].set(w1)
    w2p = jnp.zeros((HIDDEN_PAD, HIDDEN_PAD), jnp.float32).at[:w2.shape[0], :w2.shape[1]].set(w2)
    w3p = jnp.zeros((HIDDEN_PAD, OUT_PAD), jnp.float32).at[:w3.shape[0], :w3.shape[1]].set(w3)
    W = jnp.concatenate([w1p, w2p, w3p], axis=0).astype(jnp.bfloat16)  # [in_dim + 256, 128] bf16

    b1p = jnp.zeros((1, HIDDEN_PAD), jnp.float32).at[:, :b1.shape[1]].set(b1)
    b2p = jnp.zeros((1, HIDDEN_PAD), jnp.float32).at[:, :b2.shape[1]].set(b2)
    # Padded logit columns get a huge negative bias so softmax ignores them.
    b3p = jnp.full((1, OUT_PAD), NEG_BIG, jnp.float32).at[:, :b3.shape[1]].set(b3)
    pad = jnp.zeros((5, OUT_PAD), jnp.float32)              # pad to 8 sublanes
    B = jnp.concatenate([b1p, b2p, b3p, pad], axis=0)       # [8, 128] f32
    return W, B


def _choose_tile(batch, cap=2048):
    """Tile_b: multiple of 8, <= cap, dividing the batch as tightly as possible."""
    n_tiles = max(_cdiv(batch, cap), 1)
    # v7x has 2 TensorCores: keep >= 2 grid steps when the batch is big enough
    # so dimension_semantics=("parallel",) actually shards work across them.
    if n_tiles == 1 and batch >= 16:
        n_tiles = 2
    return _round_up(_cdiv(batch, n_tiles), 8)


def mlp_forward(x, w_packed, b_packed, out_dim=3):
    batch, in_dim = x.shape
    assert in_dim % 8 == 0, "input_dim is expected to be a multiple of 8"

    tile_b = _choose_tile(batch)
    grid_steps = _cdiv(batch, tile_b)
    padded_batch = grid_steps * tile_b
    if padded_batch != batch:
        # Padded rows are all-zero inputs; they flow through exp/softmax on
        # bias-only logits, which is benign (denominator >= exp(0) = 1, no NaN).
        # They are sliced off below.
        x = jnp.pad(x, ((0, padded_batch - batch), (0, 0)))

    n_w_rows = w_packed.shape[0]
    kernel = functools.partial(mlp_softmax_kernel, in_dim=in_dim)

    # Explicit VMEM budget (v5e's default scoped limit is only 16 MiB; v7x is 32/64 MiB).
    vmem_needed = (2 * tile_b * in_dim * 4          # x double buffer (f32)
                   + 2 * tile_b * OUT_STORE * 4     # out double buffer (f32)
                   + 2 * n_w_rows * HIDDEN_PAD * 2  # bf16 weight slab
                   + 2 * 8 * OUT_PAD * 4            # bias slab
                   + 6 * tile_b * HIDDEN_PAD * 4)   # in-kernel intermediates headroom
    vmem_limit = int(min(max(2 * vmem_needed, 16 * 1024 * 1024), 32 * 1024 * 1024))

    out = pl.pallas_call(
        kernel,
        out_shape=jax.ShapeDtypeStruct((padded_batch, OUT_STORE), jnp.float32),
        grid=(grid_steps,),
        in_specs=[
            pl.BlockSpec((tile_b, in_dim), lambda i: (i, 0)),        # x tile, pipelined
            pl.BlockSpec((n_w_rows, HIDDEN_PAD), lambda i: (0, 0)),  # bf16 weights, VMEM-resident
            pl.BlockSpec((8, OUT_PAD), lambda i: (0, 0)),            # f32 biases, VMEM-resident
        ],
        out_specs=pl.BlockSpec((tile_b, OUT_STORE), lambda i: (i, 0)),  # slim f32 writeback
        compiler_params=pltpu.CompilerParams(
            dimension_semantics=("parallel",),
            vmem_limit_bytes=vmem_limit),
    )(x, w_packed, b_packed)

    return out[:batch, :out_dim]


def init_linear(key, fan_in, fan_out):
    # Mimic PyTorch nn.Linear default init: U(-1/sqrt(fan_in), 1/sqrt(fan_in)).
    kw, kb = jax.random.split(key)
    bound = 1.0 / jnp.sqrt(float(fan_in))
    # Stored as [in, out] so the kernel does x @ w.
    w = jax.random.uniform(kw, (fan_in, fan_out), jnp.float32, -bound, bound)
    b = jax.random.uniform(kb, (1, fan_out), jnp.float32, -bound, bound)
    return w, b


if __name__ == "__main__":
    key = jax.random.PRNGKey(0)
    k_x, k1, k2, k3 = jax.random.split(key, 4)

    batch = 8
    input_dim = 32

    x = jax.random.normal(k_x, (batch, input_dim), jnp.float32)
    w1, b1 = init_linear(k1, input_dim, 50)
    w2, b2 = init_linear(k2, 50, 50)
    w3, b3 = init_linear(k3, 50, 3)

    # Pack once; in a real serving loop the packed slabs stay resident across calls.
    W_packed, B_packed = pack_params(w1, b1, w2, b2, w3, b3)
    W_packed, B_packed = jax.block_until_ready((W_packed, B_packed))

    out = mlp_forward(x, W_packed, B_packed, out_dim=3)
    out = jax.block_until_ready(out)

    # Reference check in plain JAX (on the original, unpadded f32 parameters).
    h1 = jnp.maximum(x @ w1 + b1, 0.0)
    h2 = jnp.maximum(h1 @ w2 + b2, 0.0)
    ref = jax.nn.softmax(h2 @ w3 + b3, axis=1)
    assert out.shape == (batch, 3)
    # Tolerance accounts for bf16 matmul operands (f32 accumulation); softmax
    # normalization itself is exact.
    assert jnp.allclose(out, ref, atol=2e-2, rtol=2e-2), float(jnp.max(jnp.abs(out - ref)))

    print("KERNEL_OK")
</pallas_src>

<mosaic_0001>
module attributes {stable_mosaic.version = 11 : i64} {
  func.func @mlp_softmax_kernel(%arg0: i32, %arg1: memref<8x32xf32, #tpu.memory_space<vmem>>, %arg2: memref<288x128xbf16, #tpu.memory_space<vmem>>, %arg3: memref<8x128xf32, #tpu.memory_space<vmem>>, %arg4: memref<8x8xf32, #tpu.memory_space<vmem>>) attributes {dimension_semantics = [#tpu.dimension_semantics<parallel>], iteration_bounds = array<i64: 1>, scalar_prefetch = 0 : i64, scratch_operands = 0 : i64, tpu.core_type = #tpu.core_type<tc>, window_params = [{transform_indices = @transform_0, window_bounds = array<i64: 8, 32>}, {pipeline_mode = #tpu.pipeline_mode<synchronous>, transform_indices = @transform_1, window_bounds = array<i64: 288, 128>}, {pipeline_mode = #tpu.pipeline_mode<synchronous>, transform_indices = @transform_2, window_bounds = array<i64: 8, 128>}, {transform_indices = @transform_3, window_bounds = array<i64: 8, 8>}]} {
    %c0 = arith.constant 0 : index
    %c0_0 = arith.constant 0 : index
    %0 = vector.load %arg3[%c0, %c0_0] : memref<8x128xf32, #tpu.memory_space<vmem>>, vector<8x128xf32>
    %c0_1 = arith.constant 0 : index
    %c0_2 = arith.constant 0 : index
    %1 = vector.load %arg1[%c0_1, %c0_2] : memref<8x32xf32, #tpu.memory_space<vmem>>, vector<8x32xf32>
    %2 = arith.truncf %1 : vector<8x32xf32> to vector<8x32xbf16>
    %c0_3 = arith.constant 0 : index
    %c0_4 = arith.constant 0 : index
    %3 = vector.load %arg2[%c0_3, %c0_4] : memref<288x128xbf16, #tpu.memory_space<vmem>>, vector<32x128xbf16>
    %cst = arith.constant dense<0.000000e+00> : vector<8x128xf32>
    %4 = tpu.matmul %2, %3, %cst {dimension_numbers = #tpu.dot_dimension_numbers<[1], [0], [0], [1], [0, 0, 1, 1], [], []>} : vector<8x32xbf16>, vector<32x128xbf16>, vector<8x128xf32> -> vector<8x128xf32>
    %5 = vector.extract_strided_slice %0 {offsets = [0, 0], sizes = [1, 128], strides = [1, 1]} : vector<8x128xf32> to vector<1x128xf32>
    %6 = vector.broadcast %5 : vector<1x128xf32> to vector<8x128xf32>
    %7 = arith.addf %4, %6 : vector<8x128xf32>
    %cst_5 = arith.constant 0.000000e+00 : f32
    %8 = vector.broadcast %cst_5 : f32 to vector<8x128xf32>
    %9 = arith.maximumf %7, %8 : vector<8x128xf32>
    %10 = arith.truncf %9 : vector<8x128xf32> to vector<8x128xbf16>
    %c32 = arith.constant 32 : index
    %c0_6 = arith.constant 0 : index
    %11 = vector.load %arg2[%c32, %c0_6] : memref<288x128xbf16, #tpu.memory_space<vmem>>, vector<128x128xbf16>
    %cst_7 = arith.constant dense<0.000000e+00> : vector<8x128xf32>
    %12 = tpu.matmul %10, %11, %cst_7 {dimension_numbers = #tpu.dot_dimension_numbers<[1], [0], [0], [1], [0, 0, 1, 1], [], []>} : vector<8x128xbf16>, vector<128x128xbf16>, vector<8x128xf32> -> vector<8x128xf32>
    %13 = vector.extract_strided_slice %0 {offsets = [1, 0], sizes = [1, 128], strides = [1, 1]} : vector<8x128xf32> to vector<1x128xf32>
    %14 = vector.broadcast %13 : vector<1x128xf32> to vector<8x128xf32>
    %15 = arith.addf %12, %14 : vector<8x128xf32>
    %cst_8 = arith.constant 0.000000e+00 : f32
    %16 = vector.broadcast %cst_8 : f32 to vector<8x128xf32>
    %17 = arith.maximumf %15, %16 : vector<8x128xf32>
    %18 = arith.truncf %17 : vector<8x128xf32> to vector<8x128xbf16>
    %c160 = arith.constant 160 : index
    %c0_9 = arith.constant 0 : index
    %19 = vector.load %arg2[%c160, %c0_9] : memref<288x128xbf16, #tpu.memory_space<vmem>>, vector<128x128xbf16>
    %cst_10 = arith.constant dense<0.000000e+00> : vector<8x128xf32>
    %20 = tpu.matmul %18, %19, %cst_10 {dimension_numbers = #tpu.dot_dimension_numbers<[1], [0], [0], [1], [0, 0, 1, 1], [], []>} : vector<8x128xbf16>, vector<128x128xbf16>, vector<8x128xf32> -> vector<8x128xf32>
    %21 = vector.extract_strided_slice %0 {offsets = [2, 0], sizes = [1, 128], strides = [1, 1]} : vector<8x128xf32> to vector<1x128xf32>
    %22 = vector.broadcast %21 : vector<1x128xf32> to vector<8x128xf32>
    %23 = arith.addf %20, %22 : vector<8x128xf32>
    %cst_11 = arith.constant dense<0xFF800000> : vector<8xf32>
    %24 = vector.multi_reduction <maximumf>, %23, %cst_11 [1] : vector<8x128xf32> to vector<8xf32>
    %25 = vector.shape_cast %24 : vector<8xf32> to vector<8x1xf32>
    %26 = vector.broadcast %25 : vector<8x1xf32> to vector<8x128xf32>
    %27 = arith.subf %23, %26 : vector<8x128xf32>
    %28 = math.exp %27 : vector<8x128xf32>
    %cst_12 = arith.constant dense<0.000000e+00> : vector<8xf32>
    %29 = vector.multi_reduction <add>, %28, %cst_12 [1] : vector<8x128xf32> to vector<8xf32>
    %30 = vector.shape_cast %29 : vector<8xf32> to vector<8x1xf32>
    %31 = vector.extract_strided_slice %28 {offsets = [0, 0], sizes = [8, 8], strides = [1, 1]} : vector<8x128xf32> to vector<8x8xf32>
    %32 = vector.broadcast %30 : vector<8x1xf32> to vector<8x8xf32>
    %33 = arith.divf %31, %32 : vector<8x8xf32>
    %c0_13 = arith.constant 0 : index
    %c0_14 = arith.constant 0 : index
    %34 = vector.load %arg4[%c0_13, %c0_14] : memref<8x8xf32, #tpu.memory_space<vmem>>, vector<8x8xf32>
    tpu.vector_store %arg4[%c0_13, %c0_14], %33 {strides = array<i32>} : memref<8x8xf32, #tpu.memory_space<vmem>>, vector<8x8xf32>,
    return
  }
  func.func @transform_0(%arg0: i32) -> (i32, i32) {
    %c0_i32 = arith.constant 0 : i32
    %c0_i32_0 = arith.constant 0 : i32
    return %arg0, %c0_i32 : i32, i32
  }
  func.func @transform_1(%arg0: i32) -> (i32, i32) {
    %c0_i32 = arith.constant 0 : i32
    %c0_i32_0 = arith.constant 0 : i32
    %c0_i32_1 = arith.constant 0 : i32
    return %c0_i32, %c0_i32_0 : i32, i32
  }
  func.func @transform_2(%arg0: i32) -> (i32, i32) {
    %c0_i32 = arith.constant 0 : i32
    %c0_i32_0 = arith.constant 0 : i32
    %c0_i32_1 = arith.constant 0 : i32
    return %c0_i32, %c0_i32_0 : i32, i32
  }
  func.func @transform_3(%arg0: i32) -> (i32, i32) {
    %c0_i32 = arith.constant 0 : i32
    %c0_i32_0 = arith.constant 0 : i32
    return %arg0, %c0_i32 : i32, i32
  }
}

</mosaic_0001>

<bundles_post_ra>
// kernel: tpu_custom_call.1
= control target key start
LH: loop header
LB: loop body
LE: loop exit
PB: predicated region body
PF: predicated region fallthrough
CT: control target
= control target key end

     0   :  { %8 = vsyncpa [#allocation3], 0  ;;  %s679_s0 = inlined_call_operand.hbm [shape: f32[8,32], index: 0, kind: input, shape index: {}]   ;;  %s680_s1 = inlined_call_operand.hbm [shape: bf16[288,128], index: 1, kind: input, shape index: {}]   ;;  %s681_s2 = inlined_call_operand.hbm [shape: f32[8,128], index: 2, kind: input, shape index: {}]   ;;  %s682_s3 = inlined_call_operand.hbm [shape: f32[8,8], index: 3, kind: output, shape index: {}]  }
   0x1   :  { %9 = vsyncpa [#allocation6], 0 }
   0x2   :  { %10 = vsyncpa [#allocation4], 0  ;;  %s579_s12 = smov [#allocation5]   ;;  %s485_s16 = scalar_lea.hbm %s680_s1, 2304 }
   0x3   :  { %s26_s13 = sshll.u32 %s579_s12, 4  ;;  %p486_p0 = scmp.ne.s32.totalorder %s680_s1, %s485_s16  ;;  %s27_s13 = int_to_ptr.vmem [resolvable:$true] %s26_s13 }
   0x4   :  { %p489_p1 = scmp.lt.u32.totalorder %s485_s16, %s680_s1 }
   0x6   :  { %p491_p2 = pnand %p489_p1, %p486_p0 }
   0x8   :  { %494 = shalt.err (!%p491_p2)
}
   0x9   :  { %s495_s21 = scalar_lea.vmem %s27_s13, 2304  ;;  %p500_p4 = scmp.lt.s32.totalorder %s27_s13, %s27_s13 }
   0xa   :  { %p496_p3 = scmp.ne.s32.totalorder %s27_s13, %s495_s21  ;;  %p501_p5 = scmp.lt.s32.totalorder %s495_s21, %s495_s21 }
   0xc   :  { %p502_p6 = por %p501_p5, %p500_p4 }
   0xe   :  { %p503_p7 = pnand %p502_p6, %p496_p3 }
  0x10   :  { %506 = shalt.err (!%p503_p7)
}
  0x11   :  { %s580_s22 = smov 64   ;;  %s581_s23 = smov 4  }
  0x12   :  { %32 = dma.hbm_to_vmem [thread:$0]  %s680_s1, 2304, %s27_s13, [#allocation6], %s580_s22, %s580_s22, %s581_s23  }
  0x13   :  { %s582_s26 = smov [#allocation2]   ;;  %s583_s28 = smov [#allocation7]  }
  0x14   :  { %s17_s27 = sshll.u32 %s582_s26, 4  ;;  %s39_s29 = sshll.u32 %s583_s28, 4  ;;  %s18_s27 = int_to_ptr.vmem [resolvable:$true] %s17_s27  ;;  %s40_s29 = int_to_ptr.vmem [resolvable:$true] %s39_s29 }
  0x15   :  { %s507_s5 = scalar_lea.hbm %s679_s0, 128 }
  0x16   :  { %p508_p8 = scmp.ne.s32.totalorder %s679_s0, %s507_s5  ;;  %p511_p9 = scmp.lt.u32.totalorder %s507_s5, %s679_s0 }
  0x18   :  { %p513_p10 = pnand %p511_p9, %p508_p8 }
  0x1a   :  { %516 = shalt.err (!%p513_p10)
}
  0x1b   :  { %s517_s1 = scalar_lea.vmem %s18_s27, 128  ;;  %p522_p12 = scmp.lt.s32.totalorder %s18_s27, %s18_s27 }
  0x1c   :  { %p518_p11 = scmp.ne.s32.totalorder %s18_s27, %s517_s1  ;;  %p523_p13 = scmp.lt.s32.totalorder %s517_s1, %s517_s1 }
  0x1e   :  { %p524_p0 = por %p523_p13, %p522_p12 }
  0x20   :  { %p525_p1 = pnand %p524_p0, %p518_p11 }
  0x22   :  { %528 = shalt.err (!%p525_p1)
}
  0x23   :  { %20 = dma.hbm_to_vmem [thread:$0]  %s679_s0, 128, %s18_s27, [#allocation3]  }
  0x24   :  { %s529_s14 = scalar_lea.hbm %s681_s2, 128 }
  0x25   :  { %p530_p2 = scmp.ne.s32.totalorder %s681_s2, %s529_s14  ;;  %p533_p3 = scmp.lt.u32.totalorder %s529_s14, %s681_s2 }
  0x27   :  { %p535_p4 = pnand %p533_p3, %p530_p2 }
  0x29   :  { %538 = shalt.err (!%p535_p4)
}
  0x2a   :  { %s539_s19 = scalar_lea.vmem %s40_s29, 128  ;;  %p544_p6 = scmp.lt.s32.totalorder %s40_s29, %s40_s29 }
  0x2b   :  { %p540_p5 = scmp.ne.s32.totalorder %s40_s29, %s539_s19  ;;  %p545_p7 = scmp.lt.s32.totalorder %s539_s19, %s539_s19 }
  0x2d   :  { %p546_p8 = por %p545_p7, %p544_p6 }
  0x2f   :  { %p547_p9 = pnand %p546_p8, %p540_p5 }
  0x31   :  { %550 = shalt.err (!%p547_p9)
}
  0x32   :  { %42 = dma.hbm_to_vmem [thread:$0]  %s681_s2, 128, %s40_s29, [#allocation6]  }
  0x33   :  { %573 = dma.done.wait [#allocation3], 128  }
  0x34   :  { %574 = vsyncadd [#allocation3], 4294967168 }
  0x35   :  { %575 = dma.done.wait [#allocation6], 2432  }
  0x36   :  { %576 = vsyncadd [#allocation6], 4294964864  ;;  %v584_v0 = vmov 0.0   ;;  %vm585_vm0 = vmmov 0   ;;  %v463_v1 = vld [vmem:[#allocation5] sm:$0xff]   ;;  %v464_v2 = vld [vmem:[#allocation5 + $0x8] sm:$0xff]   ;;  %v60_v19 = vlaneseq }
  0x37   :  { %407 = vmatprep.subr.bf16.mxu0 %v584_v0  ;;  %411 = vmatprep.mubr.msk.bf16.mxu0 %vm585_vm0, %v584_v0  ;;  %v54_v3 = vld [vmem:[#allocation2] sm:$0xff]  ;;  %v465_v4 = vld [vmem:[#allocation5 + $0x10] sm:$0xff]   ;;  %vm76_vm1 = vcmask 261120   ;;  %v467_v7 = vld [vmem:[#allocation5 + $0x20] sm:$0xff]   ;;  %s586_s2 = smov [#allocation8]   ;;  %vm349_vm2 = vcmask 64512  }
  0x38   :  { %415 = vmatprep.subr.bf16.mxu1 %v584_v0  ;;  %431 = vmatprep.mubr.msk.bf16.mxu1 %vm585_vm0, %v584_v0  ;;  %v55_v5 = vpack.c.bf16 %v54_v3, %v54_v3  ;;  %v466_v6 = vld [vmem:[#allocation5 + $0x18] sm:$0xff]   ;;  %v468_v8 = vld [vmem:[#allocation5 + $0x28] sm:$0xff]   ;;  %v469_v9 = vld [vmem:[#allocation5 + $0x30] sm:$0xff]   ;;  %v61_v20 = vshrl.u32 %v60_v19, 7  ;;  %s357_s21 = sshll.u32 %s586_s2, 4  ;;  %s358_s21 = int_to_ptr.vmem [resolvable:$true] %s357_s21 }
  0x39   :  { %408 = vmatpush3.bf16.msra.mxu0 %v463_v1  ;;  %416 = vmatpush3.bf16.msra.mxu1 %v465_v4  ;;  %v470_v10 = vld [vmem:[#allocation5 + $0x38] sm:$0xff]   ;;  %v471_v11 = vld [vmem:[#allocation5 + $0x40] sm:$0xff]   ;;  %v472_v12 = vld [vmem:[#allocation5 + $0x48] sm:$0xff]   ;;  %s551_s22 = scalar_lea.vmem %s358_s21, 128  ;;  %p556_p11 = scmp.lt.s32.totalorder %s358_s21, %s358_s21 }
  0x3a   :  { %409 = vmatprep.subr.bf16.mxu0 %v584_v0  ;;  %417 = vmatprep.subr.bf16.mxu1 %v584_v0  ;;  %v473_v13 = vld [vmem:[#allocation5 + $0x50] sm:$0xff]   ;;  %v474_v14 = vld [vmem:[#allocation5 + $0x58] sm:$0xff]   ;;  %v475_v15 = vld [vmem:[#allocation5 + $0x60] sm:$0xff]   ;;  %v62_v21 = vsub.s32 0, %v61_v20  ;;  %v140_v33 = vsub.s32 1, %v61_v20  ;;  %v250_v42 = vsub.s32 2, %v61_v20  ;;  %p552_p10 = scmp.ne.s32.totalorder %s358_s21, %s551_s22  ;;  %p557_p12 = scmp.lt.s32.totalorder %s551_s22, %s551_s22 }
  0x3b   :  { %v476_v16 = vld [vmem:[#allocation5 + $0x68] sm:$0xff]   ;;  %v477_v17 = vld [vmem:[#allocation5 + $0x70] sm:$0xff]   ;;  %v478_v18 = vld [vmem:[#allocation5 + $0x78] sm:$0xff]  }
  0x3c   :  { %v53_v22 = vld [vmem:[#allocation7] sm:$0xff]  ;;  %v479_v31 = vld [vmem:[#allocation5 + $0x80] sm:$0xff]   ;;  %v480_v32 = vld [vmem:[#allocation5 + $0x88] sm:$0xff]   ;;  %p558_p13 = por %p557_p12, %p556_p11 }
  0x3d   :  { %410 = vmatpush3.bf16.msra.mxu0 %v464_v2  ;;  %418 = vmatpush3.bf16.msra.mxu1 %v466_v6  ;;  %v63_v23 = vrot.slane %v53_v22, %v62_v21  ;;  %v141_v34 = vrot.slane %v53_v22, %v140_v33  ;;  %v251_v43 = vrot.slane %v53_v22, %v250_v42 }
  0x3e   :  { %435 = vmatprep.subr.bf16.mxu0 %v584_v0  ;;  %419 = vmatprep.subr.bf16.mxu1 %v584_v0  ;;  %p559_p0 = pnand %p558_p13, %p552_p10 }
  0x40   :  { %412 = vmatmul.mubr.msk.bf16.vlgmr.msra.gmra.mrb[0].mxu0 %vm76_vm1, %v55_v5 }
  0x41   :  { %451 = vmatprep.mubr.msk.bf16.mxu0 %vm585_vm0, %v584_v0  ;;  %420 = vmatpush3.bf16.msra.mxu1 %v467_v7 }
  0x42   :  { %421 = vmatprep.subr.bf16.mxu1 %v584_v0  ;;  %436 = vmatpush3.bf16.msra.mxu0 %v473_v13 }
  0x43   :  { %437 = vmatprep.subr.bf16.mxu0 %v584_v0 }
  0x45   :  { %422 = vmatpush3.bf16.msra.mxu1 %v468_v8 }
  0x46   :  { %423 = vmatprep.subr.bf16.mxu1 %v584_v0  ;;  %438 = vmatpush3.bf16.msra.mxu0 %v474_v14 }
  0x47   :  { %439 = vmatprep.subr.bf16.mxu0 %v584_v0 }
  0x49   :  { %424 = vmatpush3.bf16.msra.mxu1 %v469_v9 }
  0x4a   :  { %425 = vmatprep.subr.bf16.mxu1 %v584_v0  ;;  %440 = vmatpush3.bf16.msra.mxu0 %v475_v15 }
  0x4b   :  { %441 = vmatprep.subr.bf16.mxu0 %v584_v0 }
  0x4d   :  { %426 = vmatpush3.bf16.msra.mxu1 %v470_v10 }
  0x4e   :  { %427 = vmatprep.subr.bf16.mxu1 %v584_v0  ;;  %442 = vmatpush3.bf16.msra.mxu0 %v476_v16 }
  0x4f   :  { %443 = vmatprep.subr.bf16.mxu0 %v584_v0 }
  0x51   :  { %428 = vmatpush3.bf16.msra.mxu1 %v471_v11 }
  0x52   :  { %429 = vmatprep.subr.bf16.mxu1 %v584_v0  ;;  %444 = vmatpush3.bf16.msra.mxu0 %v477_v17 }
  0x53   :  { %445 = vmatprep.subr.bf16.mxu0 %v584_v0 }
  0x55   :  { %430 = vmatpush3.bf16.msra.mxu1 %v472_v12 }
  0x56   :  { %446 = vmatpush3.bf16.msra.mxu0 %v478_v18 }
  0x57   :  { %447 = vmatprep.subr.bf16.mxu0 %v584_v0 }
  0x5a   :  { %448 = vmatpush3.bf16.msra.mxu0 %v479_v31 }
  0x5b   :  { %449 = vmatprep.subr.bf16.mxu0 %v584_v0 }
  0x5e   :  { %450 = vmatpush3.bf16.msra.mxu0 %v480_v32 }
 0x113   :  { %v114_v24 = vpop.f32.mrb[0].mxu0 }
 0x114   :  { %v115_v25 = vadd.f32 %v114_v24, %v63_v23  ;;  %v413_v26 = vpop.f32.mrb[1].mxu0 }
 0x115   :  { %v117_v27 = vpop.f32.mrb[2].mxu0 }
 0x116   :  { %v120_v28 = vmax.f32 %v115_v25, 0.0  ;;  %v414_v29 = vpop.f32.mrb[3].mxu0 }
 0x118   :  { %v121_v30 = vpack.c.bf16 %v120_v28, %v120_v28 }
 0x11a   :  { %432 = vmatmul.mubr.bf16.vlgmr.msra.gmra.mrb[0].mxu1 %v121_v30 }
 0x1ed   :  { %v224_v35 = vpop.f32.mrb[0].mxu1 }
 0x1ee   :  { %v225_v36 = vadd.f32 %v224_v35, %v141_v34  ;;  %v433_v37 = vpop.f32.mrb[1].mxu1 }
 0x1ef   :  { %v227_v38 = vpop.f32.mrb[2].mxu1 }
 0x1f0   :  { %v230_v39 = vmax.f32 %v225_v36, 0.0  ;;  %v434_v40 = vpop.f32.mrb[3].mxu1 }
 0x1f2   :  { %v231_v41 = vpack.c.bf16 %v230_v39, %v230_v39 }
 0x1f4   :  { %452 = vmatmul.mubr.bf16.vlgmr.msra.gmra.mrb[4].mxu0 %v231_v41 }
 0x2c7   :  { %v334_v44 = vpop.f32.mrb[4].mxu0 }
 0x2c8   :  { %v335_v45 = vadd.f32 %v334_v44, %v251_v43  ;;  %v453_v46 = vpop.f32.mrb[5].mxu0 }
 0x2c9   :  { %v337_v47 = vpop.f32.mrb[6].mxu0 }
 0x2ca   :  { %340 = vmax.xlane.f32.xlu0 %v335_v45  ;;  %v454_v48 = vpop.f32.mrb[7].mxu0 }
 0x357   :  { %v341_v49 = vpop.xlane.xlu0 %340 }
 0x358   :  { %v342_v50 = vsub.f32 %v335_v45, %v341_v49 }
 0x35a   :  { %v343_v51 = vmul.f32 1.442695, %v342_v50 }
 0x35c   :  { %481 = vpow2.f32 %v343_v51 }
 0x366   :  { %v482_v52 = vpop.eup %481 }
 0x367   :  { %345 = vadd.xlane.f32.xlu0 %v482_v52 }
 0x3f4   :  { %v346_v53 = vpop.xlane.xlu0 %345 }
 0x3f5   :  { %483 = vrcp.f32 %v346_v53 }
 0x3ff   :  { %v484_v54 = vpop.eup %483 }
 0x400   :  { %v348_v55 = vmul.f32 %v484_v54, %v482_v52 }
 0x402   :  { %350 = vst.msk [vmem:[#allocation8] sm:$0xff] %vm349_vm2, %v348_v55 }
 0x403   :  { %562 = shalt.err (!%p559_p0)
}
 0x404   :  { %s563_s25 = scalar_lea.hbm %s682_s3, 128 }
 0x405   :  { %p564_p1 = scmp.ne.s32.totalorder %s682_s3, %s563_s25  ;;  %p567_p2 = scmp.lt.u32.totalorder %s563_s25, %s682_s3 }
 0x407   :  { %p569_p3 = pnand %p567_p2, %p564_p1 }
 0x409   :  { %572 = shalt.err (!%p569_p3)
}
 0x40a   :  { %360 = dma.vmem_to_hbm [thread:$0]  %s358_s21, 128, %s682_s3, [#allocation4]  }
 0x40b   :  { %577 = dma.done.wait [#allocation4], 128  }
 0x40c   :  { %578 = vsyncadd [#allocation4], 4294967168 }
 0x40d   :  { %364 = vsyncpa [#allocation3], 1 }
 0x40e   :  { %365 = vsyncpa [#allocation6], 1 }
 0x40f   :  { %366 = vsyncpa [#allocation4], 1 }

</bundles_post_ra>
